<compile_context>
chip_gen: v7x
topology: tpu7x:2x2x1
jax: 0.10.0
libtpu: 0.0.40
codegen_flags: <defaults>
</compile_context>

<pallas_src>
from functools import partial

import jax
import jax.numpy as jnp
from jax.experimental import pallas as pl
from jax.experimental.pallas import tpu as pltpu


def _flsl_kernel(temps_ref, xm_ref, st_ref, ms_ref, dot_ref, lse_ref,
                 *, feat_dim, num_protos):
    i = pl.program_id(1)          # row-tile reduction axis ("arbitrary")

    # Outputs double as accumulators: their block index depends only on the
    # core-split axis, so they stay resident in VMEM across the whole i axis.
    @pl.when(i == 0)
    def _():
        ms_ref[...] = jnp.zeros_like(ms_ref)
        dot_ref[...] = jnp.zeros_like(dot_ref)
        lse_ref[...] = jnp.zeros_like(lse_ref)

    inv_temp_s = temps_ref[0]     # runtime scalars from SMEM -> no recompiles
    inv_temp_t = temps_ref[1]
    eps = 1e-12                   # matches torch F.normalize (rsqrt uses eps**2)

    # --- mean-shift alignment: per-column sums of cosine-similarity products.
    # Padded rows are all-zero -> x_n == m_n == 0 -> contribute nothing.
    xm = xm_ref[...].astype(jnp.float32)                       # (rt, 2D)
    x = xm[:, :feat_dim]
    m = xm[:, feat_dim:]
    x_n = x * jax.lax.rsqrt(
        jnp.maximum(jnp.sum(x * x, axis=-1, keepdims=True), eps * eps))
    m_n = m * jax.lax.rsqrt(
        jnp.maximum(jnp.sum(m * m, axis=-1, keepdims=True), eps * eps))
    ms_ref[...] += jnp.sum(x_n * m_n, axis=0, keepdims=True)   # (1, D)

    # --- kmeans / cross-entropy term.  Per row (since sum_k t_out == 1):
    #       CE = logsumexp(s_shift) - sum_k t_out * s_shift
    # Padded rows: s_shift == 0 -> dot == 0, lse == log(K) (fixed in epilogue).
    st = st_ref[...].astype(jnp.float32)                       # (rt, 2K)
    s_logits = st[:, :num_protos] * inv_temp_s
    t_logits = st[:, num_protos:] * inv_temp_t

    s_shift = s_logits - jnp.max(s_logits, axis=-1, keepdims=True)
    lse = jnp.log(jnp.sum(jnp.exp(s_shift), axis=-1, keepdims=True))  # (rt, 1)

    t_shift = t_logits - jnp.max(t_logits, axis=-1, keepdims=True)
    t_exp = jnp.exp(t_shift)
    denom = jnp.sum(t_exp, axis=-1, keepdims=True)                    # (rt, 1)
    r = pl.reciprocal(denom, approx=True)        # EUP seed (slot has slack)
    r = r * (2.0 - denom * r)                    # one NR step -> ~f32-exact
    t_out = t_exp * r

    dot_ref[...] += jnp.sum(t_out * s_shift, axis=0, keepdims=True)   # (1, K)
    lse_ref[...] += jnp.sum(lse, axis=0, keepdims=True)               # (1, 1)


def _round_up(v, m):
    return (v + m - 1) // m * m


def _tpu_vmem_and_cores():
    """Generation-aware (VMEM capacity, TensorCores-per-chip) with safe fallbacks."""
    vmem_cap = 128 * 1024 * 1024
    try:
        info = pltpu.get_tpu_info()
        vmem_cap = int(getattr(info, "vmem_capacity_bytes", vmem_cap))
    except Exception:
        pass
    kind = ""
    try:
        kind = jax.devices()[0].device_kind.lower()
    except Exception:
        pass
    # v7x-class parts: 2 TensorCores per chip, 64 MiB VMEM per TC.
    multi_tc = ("7" in kind) or (vmem_cap <= 64 * 1024 * 1024)
    return vmem_cap, (2 if multi_tc else 1)


def flsl_loss(x, mode, student_pred, teacher_pred, epoch,
              temp_s, temp_t_schedule, coefficients=(0.3, 1.0, 5.0),
              row_tile=None, num_core_splits=None, compute_input_dtype=None):
    D = x.shape[-1]
    K = student_pred.shape[-1]
    xf = x.reshape(-1, D)
    mf = mode.reshape(-1, D)
    sf = student_pred.reshape(-1, K)
    tf_ = teacher_pred.reshape(-1, K)
    N = xf.shape[0]

    vmem_cap, n_tc = _tpu_vmem_and_cores()
    if num_core_splits is None:
        num_core_splits = n_tc if N >= 16 else 1

    # Lane densification / DMA-stream consolidation (4 streams -> 2).  The
    # optional bf16 cast fuses with the concat (single pass over the data) and
    # halves the kernel's HBM traffic; accumulation stays f32 in-kernel.
    xm = jnp.concatenate([xf, mf], axis=-1)        # [N, 2D]
    st = jnp.concatenate([sf, tf_], axis=-1)       # [N, 2K]
    if compute_input_dtype is not None:
        xm = xm.astype(compute_input_dtype)
        st = st.astype(compute_input_dtype)
    in_itemsize = max(jnp.dtype(xm.dtype).itemsize, jnp.dtype(st.dtype).itemsize)

    if row_tile is None:
        # ~22% of this generation's VMEM for the double-buffered inputs plus
        # the live f32-upcast intermediates (not a fixed 8 MiB).
        budget = int(0.22 * vmem_cap)
        per_row_inputs = 2 * 2 * (D + K) * in_itemsize   # 2 bufs x (2D + 2K)
        per_row_f32_tmp = 16 * (D + K)                   # ~4 live f32 tiles
        row_tile = budget // max(per_row_inputs + per_row_f32_tmp, 1)
        row_tile = max(8, min(8192, (row_tile // 8) * 8))
    rows_per_split = -(-N // num_core_splits)
    row_tile = min(row_tile, _round_up(rows_per_split, 8))
    row_tile = max(8, (row_tile // 8) * 8)
    assert row_tile % 8 == 0

    # Pad rows to a multiple of num_core_splits * row_tile with zeros; the
    # padded rows' only nonzero contribution (log(K) per row to the lse sum)
    # is subtracted exactly in the epilogue.
    n_pad = _round_up(N, num_core_splits * row_tile)
    if n_pad != N:
        pad = n_pad - N
        xm = jnp.pad(xm, ((0, pad), (0, 0)))
        st = jnp.pad(st, ((0, pad), (0, 0)))
    tiles_per_split = n_pad // (num_core_splits * row_tile)

    # Runtime scalar temperatures (jit-safe, no per-epoch Mosaic recompile).
    temp_t = jnp.asarray(temp_t_schedule)[epoch]
    inv_temps = jnp.stack([
        1.0 / jnp.asarray(temp_s, dtype=jnp.float32),
        1.0 / temp_t.astype(jnp.float32),
    ]).astype(jnp.float32)

    # Scoped-VMEM budget: double-buffered inputs + estimated live f32 temps,
    # floored at the platform default and capped well below physical capacity
    # (~62% on 64 MiB v7x -> ~40 MiB, ~78% on 128 MiB v5e/v6e -> <=100 MiB).
    dbuf_bytes = 4 * row_tile * (D + K) * in_itemsize
    tmp_bytes = 16 * row_tile * (D + K)
    need = dbuf_bytes + tmp_bytes + (4 << 20)
    if vmem_cap <= 64 * 1024 * 1024:
        cap = int(0.625 * vmem_cap)
    else:
        cap = min(100 * 1024 * 1024, int(0.78 * vmem_cap))
    vmem_limit = int(min(cap, max(32 * 1024 * 1024, need)))

    kernel = partial(_flsl_kernel, feat_dim=D, num_protos=K)
    feat_map = lambda c, i: (c * tiles_per_split + i, 0)
    out_map = lambda c, i: (c, 0, 0)

    ms_part, dot_part, lse_part = pl.pallas_call(
        kernel,
        out_shape=(
            jax.ShapeDtypeStruct((num_core_splits, 1, D), jnp.float32),
            jax.ShapeDtypeStruct((num_core_splits, 1, K), jnp.float32),
            jax.ShapeDtypeStruct((num_core_splits, 1, 1), jnp.float32),
        ),
        grid_spec=pltpu.PrefetchScalarGridSpec(
            num_scalar_prefetch=0,
            grid=(num_core_splits, tiles_per_split),
            in_specs=[
                pl.BlockSpec(memory_space=pltpu.MemorySpace.SMEM),  # inv temps
                pl.BlockSpec((row_tile, 2 * D), feat_map),
                pl.BlockSpec((row_tile, 2 * K), feat_map),
            ],
            out_specs=[
                # Leading core-split dim squeezed -> kernel sees 2-D refs
                # (no in-kernel reshape).
                pl.BlockSpec((None, 1, D), out_map),
                pl.BlockSpec((None, 1, K), out_map),
                pl.BlockSpec((None, 1, 1), out_map),
            ],
        ),
        compiler_params=pltpu.CompilerParams(
            # TODO(synk): on v7x, verify via trace/bundle dump that the
            # "parallel" c axis is sharded across both TensorCores; otherwise
            # move to pltpu.CORE_PARALLEL / pl.core_map.
            dimension_semantics=("parallel", "arbitrary"),
            vmem_limit_bytes=vmem_limit),
    )(inv_temps, xm, st)

    # Final scalar collapse (tiny) in plain JAX.
    n_f = jnp.float32(N)
    ms_sum = jnp.sum(ms_part)
    lse_sum = jnp.sum(lse_part)
    if n_pad != N:
        # Exact: zero-padded student rows have s_shift == 0 -> lse == log(K),
        # independent of temperature, and contribute 0 to ms/dot.
        lse_sum = lse_sum - jnp.float32(n_pad - N) * jnp.log(jnp.float32(K))
    ce_sum = lse_sum - jnp.sum(dot_part)
    ms_loss = 2.0 - 2.0 * ms_sum / n_f
    kmeans_loss = ce_sum / n_f
    # TODO(synk): volume_maximization / centering are None in this config (no-op).
    vmr = jnp.float32(0.0)
    ups, eta, gam = coefficients
    total_loss = ups * ms_loss + eta * kmeans_loss + gam * vmr
    return total_loss, (ms_loss, kmeans_loss, vmr)


def _flsl_loss_ref(x, mode, student_pred, teacher_pred, epoch,
                   temp_s, temp_t_schedule, coefficients=(0.3, 1.0, 5.0)):
    # Pure-JAX reference mirroring the PyTorch forward.
    eps = 1e-12
    x_n = x / jnp.maximum(jnp.linalg.norm(x, axis=-1, keepdims=True), eps)
    m_n = mode / jnp.maximum(jnp.linalg.norm(mode, axis=-1, keepdims=True), eps)
    ms_loss = 2.0 - 2.0 * jnp.mean(jnp.sum(x_n * m_n, axis=-1))
    s_out = jax.nn.softmax(student_pred / temp_s, axis=-1)
    t_out = jax.nn.softmax(teacher_pred / jnp.asarray(temp_t_schedule)[epoch], axis=-1)
    kmeans_loss = -jnp.mean(jnp.sum(t_out * jnp.log(s_out), axis=-1))
    vmr = 0.0
    ups, eta, gam = coefficients
    return ups * ms_loss + eta * kmeans_loss + gam * vmr, (ms_loss, kmeans_loss, vmr)


if __name__ == "__main__":
    temp_s = 0.1
    temp_t_schedule = jnp.linspace(0.04, 0.07, 10)
    epoch = 3
    coefficients = (0.3, 1.0, 5.0)

    def check(xs, kwargs, rtol, atol, ref_inputs=None):
        xi, mi, si, ti = xs
        total, (ms_l, km_l, _) = flsl_loss(
            xi, mi, si, ti, epoch, temp_s, temp_t_schedule, coefficients, **kwargs)
        jax.block_until_ready(total)
        rx, rm, rs, rt_ = ref_inputs if ref_inputs is not None else xs
        ref_total, (ref_ms, ref_km, _) = _flsl_loss_ref(
            rx, rm, rs, rt_, epoch, temp_s, temp_t_schedule, coefficients)
        assert jnp.allclose(total, ref_total, rtol=rtol, atol=atol), (total, ref_total)
        assert jnp.allclose(ms_l, ref_ms, rtol=rtol, atol=atol), (ms_l, ref_ms)
        assert jnp.allclose(km_l, ref_km, rtol=rtol, atol=atol), (km_l, ref_km)

    # Config 1: auto-tiled, auto core-split, no padding needed.
    B, S, D, K = 2, 8, 32, 64
    k1, k2, k3, k4 = jax.random.split(jax.random.PRNGKey(0), 4)
    x = jax.random.normal(k1, (B, S, D), jnp.float32)
    mode = jax.random.normal(k2, (B, S, D), jnp.float32)
    sp = jax.random.normal(k3, (B, S, K), jnp.float32)
    tp = jax.random.normal(k4, (B, S, K), jnp.float32)
    check((x, mode, sp, tp), {}, 1e-4, 1e-4)

    # Config 2: ragged token count -> exercises zero-padding, the epilogue
    # log(K) correction, and a multi-tile reduction axis.
    B2, S2 = 3, 5
    k5, k6, k7, k8 = jax.random.split(jax.random.PRNGKey(1), 4)
    x2 = jax.random.normal(k5, (B2, S2, D), jnp.float32)
    m2 = jax.random.normal(k6, (B2, S2, D), jnp.float32)
    s2 = jax.random.normal(k7, (B2, S2, K), jnp.float32)
    t2 = jax.random.normal(k8, (B2, S2, K), jnp.float32)
    check((x2, m2, s2, t2), dict(row_tile=8, num_core_splits=1), 1e-4, 1e-4)

    # Config 3: explicit 2-way core split + bf16 input cast (reference is
    # evaluated on the same bf16-quantized inputs, so only the kernel's
    # arithmetic path differs).
    q = lambda a: a.astype(jnp.bfloat16).astype(jnp.float32)
    check((x2, m2, s2, t2),
          dict(row_tile=8, num_core_splits=2, compute_input_dtype=jnp.bfloat16),
          1e-3, 1e-3,
          ref_inputs=(q(x2), q(m2), q(s2), q(t2)))

    print("KERNEL_OK")
</pallas_src>

<mosaic_0001>
module attributes {stable_mosaic.version = 11 : i64} {
  func.func @_flsl_kernel(%arg0: i32, %arg1: i32, %arg2: memref<2xf32, #tpu.memory_space<smem>>, %arg3: memref<16x64xf32, #tpu.memory_space<vmem>>, %arg4: memref<16x128xf32, #tpu.memory_space<vmem>>, %arg5: memref<1x1x32xf32, #tpu.memory_space<vmem>>, %arg6: memref<1x1x64xf32, #tpu.memory_space<vmem>>, %arg7: memref<1x1x1xf32, #tpu.memory_space<vmem>>) attributes {dimension_semantics = [#tpu.dimension_semantics<parallel>, #tpu.dimension_semantics<arbitrary>], iteration_bounds = array<i64: 1, 1>, scalar_prefetch = 0 : i64, scratch_operands = 0 : i64, tpu.core_type = #tpu.core_type<tc>, window_params = [{transform_indices = @transform_0, window_bounds = array<i64: 2>}, {transform_indices = @transform_1, window_bounds = array<i64: 16, 64>}, {transform_indices = @transform_2, window_bounds = array<i64: 16, 128>}, {transform_indices = @transform_3, window_bounds = array<i64: 1, 1, 32>}, {transform_indices = @transform_4, window_bounds = array<i64: 1, 1, 64>}, {transform_indices = @transform_5, window_bounds = array<i64: 1, 1, 1>}]} {
    %c0_i32 = arith.constant 0 : i32
    %0 = arith.cmpi eq, %arg1, %c0_i32 : i32
    %1 = arith.extui %0 : i1 to i32
    %c0_i32_0 = arith.constant 0 : i32
    %2 = arith.cmpi ne, %1, %c0_i32_0 : i32
    scf.if %2 {
      %cst_34 = arith.constant 0.000000e+00 : f32
      %79 = vector.broadcast %cst_34 : f32 to vector<1x32xf32>
      %c0_35 = arith.constant 0 : index
      %c0_36 = arith.constant 0 : index
      %c0_37 = arith.constant 0 : index
      %80 = vector.load %arg5[%c0_35, %c0_36, %c0_37] : memref<1x1x32xf32, #tpu.memory_space<vmem>>, vector<1x1x32xf32>
      %81 = vector.shape_cast %80 : vector<1x1x32xf32> to vector<1x32xf32>
      %82 = vector.shape_cast %79 : vector<1x32xf32> to vector<1x1x32xf32>
      tpu.vector_store %arg5[%c0_35, %c0_36, %c0_37], %82 {strides = array<i32>} : memref<1x1x32xf32, #tpu.memory_space<vmem>>, vector<1x1x32xf32>,
      %cst_38 = arith.constant 0.000000e+00 : f32
      %83 = vector.broadcast %cst_38 : f32 to vector<1x64xf32>
      %c0_39 = arith.constant 0 : index
      %c0_40 = arith.constant 0 : index
      %c0_41 = arith.constant 0 : index
      %84 = vector.load %arg6[%c0_39, %c0_40, %c0_41] : memref<1x1x64xf32, #tpu.memory_space<vmem>>, vector<1x1x64xf32>
      %85 = vector.shape_cast %84 : vector<1x1x64xf32> to vector<1x64xf32>
      %86 = vector.shape_cast %83 : vector<1x64xf32> to vector<1x1x64xf32>
      tpu.vector_store %arg6[%c0_39, %c0_40, %c0_41], %86 {strides = array<i32>} : memref<1x1x64xf32, #tpu.memory_space<vmem>>, vector<1x1x64xf32>,
      %cst_42 = arith.constant 0.000000e+00 : f32
      %87 = vector.broadcast %cst_42 : f32 to vector<1x1xf32>
      %c0_43 = arith.constant 0 : index
      %c0_44 = arith.constant 0 : index
      %c0_45 = arith.constant 0 : index
      %88 = vector.load %arg7[%c0_43, %c0_44, %c0_45] : memref<1x1x1xf32, #tpu.memory_space<vmem>>, vector<1x1x1xf32>
      %89 = vector.shape_cast %88 : vector<1x1x1xf32> to vector<1x1xf32>
      %90 = vector.shape_cast %87 : vector<1x1xf32> to vector<1x1x1xf32>
      tpu.vector_store %arg7[%c0_43, %c0_44, %c0_45], %90 {strides = array<i32>} : memref<1x1x1xf32, #tpu.memory_space<vmem>>, vector<1x1x1xf32>,
    } else {
    }
    %c0 = arith.constant 0 : index
    %3 = memref.load %arg2[%c0] : memref<2xf32, #tpu.memory_space<smem>>
    %c1 = arith.constant 1 : index
    %4 = memref.load %arg2[%c1] : memref<2xf32, #tpu.memory_space<smem>>
    %c0_1 = arith.constant 0 : index
    %c0_2 = arith.constant 0 : index
    %5 = vector.load %arg3[%c0_1, %c0_2] : memref<16x64xf32, #tpu.memory_space<vmem>>, vector<16x64xf32>
    %6 = vector.extract_strided_slice %5 {offsets = [0, 0], sizes = [16, 32], strides = [1, 1]} : vector<16x64xf32> to vector<16x32xf32>
    %7 = vector.extract_strided_slice %5 {offsets = [0, 32], sizes = [16, 32], strides = [1, 1]} : vector<16x64xf32> to vector<16x32xf32>
    %8 = arith.mulf %6, %6 : vector<16x32xf32>
    %cst = arith.constant dense<0.000000e+00> : vector<16xf32>
    %9 = vector.multi_reduction <add>, %8, %cst [1] : vector<16x32xf32> to vector<16xf32>
    %10 = vector.shape_cast %9 : vector<16xf32> to vector<16x1xf32>
    %cst_3 = arith.constant 1.000000e-24 : f32
    %11 = vector.broadcast %cst_3 : f32 to vector<16x1xf32>
    %12 = arith.maximumf %10, %11 : vector<16x1xf32>
    %13 = math.rsqrt %12 : vector<16x1xf32>
    %14 = vector.broadcast %13 : vector<16x1xf32> to vector<16x32xf32>
    %15 = arith.mulf %6, %14 : vector<16x32xf32>
    %16 = arith.mulf %7, %7 : vector<16x32xf32>
    %cst_4 = arith.constant dense<0.000000e+00> : vector<16xf32>
    %17 = vector.multi_reduction <add>, %16, %cst_4 [1] : vector<16x32xf32> to vector<16xf32>
    %18 = vector.shape_cast %17 : vector<16xf32> to vector<16x1xf32>
    %cst_5 = arith.constant 1.000000e-24 : f32
    %19 = vector.broadcast %cst_5 : f32 to vector<16x1xf32>
    %20 = arith.maximumf %18, %19 : vector<16x1xf32>
    %21 = math.rsqrt %20 : vector<16x1xf32>
    %22 = vector.broadcast %21 : vector<16x1xf32> to vector<16x32xf32>
    %23 = arith.mulf %7, %22 : vector<16x32xf32>
    %c0_6 = arith.constant 0 : index
    %c0_7 = arith.constant 0 : index
    %c0_8 = arith.constant 0 : index
    %24 = vector.load %arg5[%c0_6, %c0_7, %c0_8] : memref<1x1x32xf32, #tpu.memory_space<vmem>>, vector<1x1x32xf32>
    %25 = vector.shape_cast %24 : vector<1x1x32xf32> to vector<1x32xf32>
    %26 = arith.mulf %15, %23 : vector<16x32xf32>
    %cst_9 = arith.constant dense<0.000000e+00> : vector<32xf32>
    %27 = vector.multi_reduction <add>, %26, %cst_9 [0] : vector<16x32xf32> to vector<32xf32>
    %28 = vector.shape_cast %27 : vector<32xf32> to vector<1x32xf32>
    %29 = arith.addf %25, %28 : vector<1x32xf32>
    %c0_10 = arith.constant 0 : index
    %c0_11 = arith.constant 0 : index
    %c0_12 = arith.constant 0 : index
    %30 = vector.load %arg5[%c0_10, %c0_11, %c0_12] : memref<1x1x32xf32, #tpu.memory_space<vmem>>, vector<1x1x32xf32>
    %31 = vector.shape_cast %30 : vector<1x1x32xf32> to vector<1x32xf32>
    %32 = vector.shape_cast %29 : vector<1x32xf32> to vector<1x1x32xf32>
    tpu.vector_store %arg5[%c0_10, %c0_11, %c0_12], %32 {strides = array<i32>} : memref<1x1x32xf32, #tpu.memory_space<vmem>>, vector<1x1x32xf32>,
    %c0_13 = arith.constant 0 : index
    %c0_14 = arith.constant 0 : index
    %33 = vector.load %arg4[%c0_13, %c0_14] : memref<16x128xf32, #tpu.memory_space<vmem>>, vector<16x128xf32>
    %34 = vector.extract_strided_slice %33 {offsets = [0, 0], sizes = [16, 64], strides = [1, 1]} : vector<16x128xf32> to vector<16x64xf32>
    %35 = vector.broadcast %3 : f32 to vector<16x64xf32>
    %36 = arith.mulf %34, %35 : vector<16x64xf32>
    %37 = vector.extract_strided_slice %33 {offsets = [0, 64], sizes = [16, 64], strides = [1, 1]} : vector<16x128xf32> to vector<16x64xf32>
    %38 = vector.broadcast %4 : f32 to vector<16x64xf32>
    %39 = arith.mulf %37, %38 : vector<16x64xf32>
    %cst_15 = arith.constant dense<0xFF800000> : vector<16xf32>
    %40 = vector.multi_reduction <maximumf>, %36, %cst_15 [1] : vector<16x64xf32> to vector<16xf32>
    %41 = vector.shape_cast %40 : vector<16xf32> to vector<16x1xf32>
    %42 = vector.broadcast %41 : vector<16x1xf32> to vector<16x64xf32>
    %43 = arith.subf %36, %42 : vector<16x64xf32>
    %44 = math.exp %43 : vector<16x64xf32>
    %cst_16 = arith.constant dense<0.000000e+00> : vector<16xf32>
    %45 = vector.multi_reduction <add>, %44, %cst_16 [1] : vector<16x64xf32> to vector<16xf32>
    %46 = vector.shape_cast %45 : vector<16xf32> to vector<16x1xf32>
    %47 = math.log %46 : vector<16x1xf32>
    %cst_17 = arith.constant dense<0xFF800000> : vector<16xf32>
    %48 = vector.multi_reduction <maximumf>, %39, %cst_17 [1] : vector<16x64xf32> to vector<16xf32>
    %49 = vector.shape_cast %48 : vector<16xf32> to vector<16x1xf32>
    %50 = vector.broadcast %49 : vector<16x1xf32> to vector<16x64xf32>
    %51 = arith.subf %39, %50 : vector<16x64xf32>
    %52 = math.exp %51 : vector<16x64xf32>
    %cst_18 = arith.constant dense<0.000000e+00> : vector<16xf32>
    %53 = vector.multi_reduction <add>, %52, %cst_18 [1] : vector<16x64xf32> to vector<16xf32>
    %54 = vector.shape_cast %53 : vector<16xf32> to vector<16x1xf32>
    %55 = tpu.reciprocal %54 {approx = true} : vector<16x1xf32> -> vector<16x1xf32>
    %56 = arith.mulf %54, %55 : vector<16x1xf32>
    %cst_19 = arith.constant 2.000000e+00 : f32
    %57 = vector.broadcast %cst_19 : f32 to vector<16x1xf32>
    %58 = arith.subf %57, %56 : vector<16x1xf32>
    %59 = arith.mulf %55, %58 : vector<16x1xf32>
    %60 = vector.broadcast %59 : vector<16x1xf32> to vector<16x64xf32>
    %61 = arith.mulf %52, %60 : vector<16x64xf32>
    %c0_20 = arith.constant 0 : index
    %c0_21 = arith.constant 0 : index
    %c0_22 = arith.constant 0 : index
    %62 = vector.load %arg6[%c0_20, %c0_21, %c0_22] : memref<1x1x64xf32, #tpu.memory_space<vmem>>, vector<1x1x64xf32>
    %63 = vector.shape_cast %62 : vector<1x1x64xf32> to vector<1x64xf32>
    %64 = arith.mulf %61, %43 : vector<16x64xf32>
    %cst_23 = arith.constant dense<0.000000e+00> : vector<64xf32>
    %65 = vector.multi_reduction <add>, %64, %cst_23 [0] : vector<16x64xf32> to vector<64xf32>
    %66 = vector.shape_cast %65 : vector<64xf32> to vector<1x64xf32>
    %67 = arith.addf %63, %66 : vector<1x64xf32>
    %c0_24 = arith.constant 0 : index
    %c0_25 = arith.constant 0 : index
    %c0_26 = arith.constant 0 : index
    %68 = vector.load %arg6[%c0_24, %c0_25, %c0_26] : memref<1x1x64xf32, #tpu.memory_space<vmem>>, vector<1x1x64xf32>
    %69 = vector.shape_cast %68 : vector<1x1x64xf32> to vector<1x64xf32>
    %70 = vector.shape_cast %67 : vector<1x64xf32> to vector<1x1x64xf32>
    tpu.vector_store %arg6[%c0_24, %c0_25, %c0_26], %70 {strides = array<i32>} : memref<1x1x64xf32, #tpu.memory_space<vmem>>, vector<1x1x64xf32>,
    %c0_27 = arith.constant 0 : index
    %c0_28 = arith.constant 0 : index
    %c0_29 = arith.constant 0 : index
    %71 = vector.load %arg7[%c0_27, %c0_28, %c0_29] : memref<1x1x1xf32, #tpu.memory_space<vmem>>, vector<1x1x1xf32>
    %72 = vector.shape_cast %71 : vector<1x1x1xf32> to vector<1x1xf32>
    %cst_30 = arith.constant dense<0.000000e+00> : vector<1xf32>
    %73 = vector.multi_reduction <add>, %47, %cst_30 [0] : vector<16x1xf32> to vector<1xf32>
    %74 = vector.shape_cast %73 : vector<1xf32> to vector<1x1xf32>
    %75 = arith.addf %72, %74 : vector<1x1xf32>
    %c0_31 = arith.constant 0 : index
    %c0_32 = arith.constant 0 : index
    %c0_33 = arith.constant 0 : index
    %76 = vector.load %arg7[%c0_31, %c0_32, %c0_33] : memref<1x1x1xf32, #tpu.memory_space<vmem>>, vector<1x1x1xf32>
    %77 = vector.shape_cast %76 : vector<1x1x1xf32> to vector<1x1xf32>
    %78 = vector.shape_cast %75 : vector<1x1xf32> to vector<1x1x1xf32>
    tpu.vector_store %arg7[%c0_31, %c0_32, %c0_33], %78 {strides = array<i32>} : memref<1x1x1xf32, #tpu.memory_space<vmem>>, vector<1x1x1xf32>,
    return
  }
  func.func @transform_0(%arg0: i32, %arg1: i32) -> i32 {
    %c0_i32 = arith.constant 0 : i32
    %c0_i32_0 = arith.constant 0 : i32
    return %c0_i32 : i32
  }
  func.func @transform_1(%arg0: i32, %arg1: i32) -> (i32, i32) {
    %c1_i32 = arith.constant 1 : i32
    %0 = arith.muli %arg0, %c1_i32 : i32
    %1 = arith.addi %0, %arg1 : i32
    %c0_i32 = arith.constant 0 : i32
    %c0_i32_0 = arith.constant 0 : i32
    return %1, %c0_i32 : i32, i32
  }
  func.func @transform_2(%arg0: i32, %arg1: i32) -> (i32, i32) {
    %c1_i32 = arith.constant 1 : i32
    %0 = arith.muli %arg0, %c1_i32 : i32
    %1 = arith.addi %0, %arg1 : i32
    %c0_i32 = arith.constant 0 : i32
    %c0_i32_0 = arith.constant 0 : i32
    return %1, %c0_i32 : i32, i32
  }
  func.func @transform_3(%arg0: i32, %arg1: i32) -> (i32, i32, i32) {
    %c0_i32 = arith.constant 0 : i32
    %c0_i32_0 = arith.constant 0 : i32
    %c0_i32_1 = arith.constant 0 : i32
    return %arg0, %c0_i32, %c0_i32_0 : i32, i32, i32
  }
  func.func @transform_4(%arg0: i32, %arg1: i32) -> (i32, i32, i32) {
    %c0_i32 = arith.constant 0 : i32
    %c0_i32_0 = arith.constant 0 : i32
    %c0_i32_1 = arith.constant 0 : i32
    return %arg0, %c0_i32, %c0_i32_0 : i32, i32, i32
  }
  func.func @transform_5(%arg0: i32, %arg1: i32) -> (i32, i32, i32) {
    %c0_i32 = arith.constant 0 : i32
    %c0_i32_0 = arith.constant 0 : i32
    %c0_i32_1 = arith.constant 0 : i32
    return %arg0, %c0_i32, %c0_i32_0 : i32, i32, i32
  }
}

</mosaic_0001>

<bundles_post_ra>
// kernel: tpu_custom_call.1
= control target key start
LH: loop header
LB: loop body
LE: loop exit
PB: predicated region body
PF: predicated region fallthrough
CT: control target
= control target key end

     0   :  { %11 = vsyncpa [#allocation5], 0  ;;  %s646_s0 = inlined_call_operand.hbm [shape: f32[2], index: 0, kind: input, shape index: {}]   ;;  %s647_s1 = inlined_call_operand.hbm [shape: f32[16,64], index: 1, kind: input, shape index: {}]   ;;  %s648_s2 = inlined_call_operand.hbm [shape: f32[16,128], index: 2, kind: input, shape index: {}]   ;;  %s649_s3 = inlined_call_operand.hbm [shape: f32[1,1,32], index: 3, kind: output, shape index: {0}]   ;;  %s650_s4 = inlined_call_operand.hbm [shape: f32[1,1,64], index: 4, kind: output, shape index: {1}]   ;;  %s651_s5 = inlined_call_operand.hbm [shape: f32[1,1,1], index: 5, kind: output, shape index: {2}]  }
   0x1   :  { %12 = vsyncpa [#allocation3], 0 }
   0x2   :  { %13 = vsyncpa [#allocation8], 0 }
   0x3   :  { %14 = vsyncpa [#allocation4], 0 }
   0x4   :  { %15 = vsyncpa [#allocation11], 0  ;;  %s343_s20 = scalar_lea.hbm %s646_s0, 16 }
   0x5   :  { %p344_p0 = scmp.ne.s32.totalorder %s646_s0, %s343_s20  ;;  %p347_p1 = scmp.lt.u32.totalorder %s343_s20, %s646_s0 }
   0x7   :  { %p349_p2 = pnand %p347_p1, %p344_p0 }
   0x9   :  { %352 = shalt.err (!%p349_p2)
}
   0xa   :  { %s473_s25 = smov [#allocation2]   ;;  %s474_s28 = smov [#allocation6]  }
   0xb   :  { %23 = dma.hbm_to_smem %s646_s0, 16, %s473_s25, [#allocation5]  }
   0xc   :  { %s33_s29 = sshll.u32 %s474_s28, 4  ;;  %s353_s7 = scalar_lea.hbm %s647_s1, 256  ;;  %s34_s29 = int_to_ptr.vmem [resolvable:$true] %s33_s29 }
   0xd   :  { %p354_p3 = scmp.ne.s32.totalorder %s647_s1, %s353_s7  ;;  %p357_p4 = scmp.lt.u32.totalorder %s353_s7, %s647_s1 }
   0xf   :  { %p359_p5 = pnand %p357_p4, %p354_p3 }
  0x11   :  { %362 = shalt.err (!%p359_p5)
}
  0x12   :  { %s363_s12 = scalar_lea.vmem %s34_s29, 256  ;;  %p368_p7 = scmp.lt.s32.totalorder %s34_s29, %s34_s29 }
  0x13   :  { %p364_p6 = scmp.ne.s32.totalorder %s34_s29, %s363_s12  ;;  %p369_p8 = scmp.lt.s32.totalorder %s363_s12, %s363_s12 }
  0x15   :  { %p370_p9 = por %p369_p8, %p368_p7 }
  0x17   :  { %p371_p10 = pnand %p370_p9, %p364_p6 }
  0x19   :  { %374 = shalt.err (!%p371_p10)
}
  0x1a   :  { %s475_s0 = smov 128   ;;  %s476_s13 = smov 8  }
  0x1b   :  { %39 = dma.hbm_to_vmem [thread:$0]  %s647_s1, 256, %s34_s29, [#allocation3], %s475_s0, %s475_s0, %s476_s13  }
  0x1c   :  { %s477_s16 = smov [#allocation7]   ;;  %s375_s20 = scalar_lea.hbm %s648_s2, 256 }
  0x1d   :  { %s49_s17 = sshll.u32 %s477_s16, 4  ;;  %p376_p11 = scmp.ne.s32.totalorder %s648_s2, %s375_s20  ;;  %s50_s17 = int_to_ptr.vmem [resolvable:$true] %s49_s17 }
  0x1e   :  { %p379_p12 = scmp.lt.u32.totalorder %s375_s20, %s648_s2 }
  0x20   :  { %p381_p13 = pnand %p379_p12, %p376_p11 }
  0x22   :  { %384 = shalt.err (!%p381_p13)
}
  0x23   :  { %s385_s25 = scalar_lea.vmem %s50_s17, 256  ;;  %p390_p1 = scmp.lt.s32.totalorder %s50_s17, %s50_s17 }
  0x24   :  { %p386_p0 = scmp.ne.s32.totalorder %s50_s17, %s385_s25  ;;  %p391_p2 = scmp.lt.s32.totalorder %s385_s25, %s385_s25 }
  0x26   :  { %p392_p3 = por %p391_p2, %p390_p1 }
  0x28   :  { %p393_p4 = pnand %p392_p3, %p386_p0 }
  0x2a   :  { %396 = shalt.err (!%p393_p4)
}
  0x2b   :  { %55 = dma.hbm_to_vmem [thread:$0]  %s648_s2, 256, %s50_s17, [#allocation8], %s475_s0, %s475_s0, %s476_s13  }
  0x2c   :  { %463 = dma.done.wait [#allocation5], 16  }
  0x2d   :  { %464 = vsyncadd [#allocation5], 4294967280 }
  0x2e   :  { %465 = dma.done.wait [#allocation3], 256  }
  0x2f   :  { %466 = vsyncadd [#allocation3], 4294967040 }
  0x30   :  { %467 = dma.done.wait [#allocation8], 256  }
  0x31   :  { %468 = vsyncadd [#allocation8], 4294967040 }
  0x32   :  { %65 = sfence }
  0x33   :  { %s306_s27 = sld [smem:[#allocation2 + $0x1]]  ;;  %v142_v0 = vld [vmem:[#allocation7] sm:$0xff]  ;;  %v143_v1 = vld [vmem:[#allocation7 + $0x8] sm:$0xff]  ;;  %vm173_vm0 = vcmask 1048064   ;;  %v553_v7 = vld [vmem:[#allocation6] sm:$0xff]  ;;  %s478_s2 = smov 96  }
  0x34   :  { %v84_v8 = vmul.f32 %v553_v7, %v553_v7  ;;  %s80_s28 = sld [smem:[#allocation2]]  ;;  %vm150_vm1 = vcmask 523264   ;;  %s479_s29 = smov 64   ;;  %v563_v20 = vld [vmem:[#allocation6 + $0x8] sm:$0xff]  ;;  %vm86_vm2 = vcmask 261120   ;;  %vm78_vm3 = vcmask 0  }
  0x35   :  { %v85_v22 = vmul.f32 %v563_v20, %v563_v20  ;;  %v480_v48 = vmov 0.0   ;;  %vm74_vm4 = vcmask 253952   ;;  %vm76_vm5 = vcmask 516096   ;;  %s482_s30 = smov [#allocation9]  }
  0x36   :  { %v87_v35 = vsel %vm86_vm2, %v84_v8, 0.0  ;;  %79 = vst.msk [vmem:[#allocation12] sm:$0x1] %vm78_vm3, %v480_v48  ;;  %s268_s6 = sshll.u32 %s482_s30, 4  ;;  %s269_s6 = int_to_ptr.vmem [resolvable:$true] %s268_s6 }
  0x37   :  { %v90_v41 = vsel %vm86_vm2, %v85_v22, 0.0  ;;  %75 = vst.msk [vmem:[#allocation9] sm:$0x1] %vm74_vm4, %v480_v48  ;;  %s397_s7 = scalar_lea.vmem %s269_s6, 16  ;;  %s401_s8 = scalar_lea.vmem %s269_s6, 32 }
  0x38   :  { %77 = vst.msk [vmem:[#allocation10] sm:$0x1] %vm76_vm5, %v480_v48  ;;  %p398_p5 = scmp.ne.s32.totalorder %s269_s6, %s397_s7  ;;  %p402_p6 = scmp.lt.s32.totalorder %s269_s6, %s269_s6 }
  0x39   :  { %v147_v2 = vstv %s306_s27  ;;  %p403_p7 = scmp.lt.s32.totalorder %s401_s8, %s397_s7 }
  0x3a   :  { %v148_v3 = vmul.f32 %v147_v2, %v142_v0  ;;  %v149_v4 = vmul.f32 %v147_v2, %v143_v1  ;;  %v144_v9 = vstv %s80_s28 }
  0x3b   :  { %v145_v10 = vmul.f32 %v144_v9, %v142_v0  ;;  %v146_v11 = vmul.f32 %v144_v9, %v143_v1  ;;  %p404_p8 = por %p403_p7, %p402_p6 }
  0x3c   :  { %v174_v5 = vsel %vm173_vm0, %v148_v3, -inf  ;;  %v177_v6 = vsel %vm173_vm0, %v149_v4, -inf }
  0x3d   :  { %175 = vmax.xlane.f32.xlu0 %v174_v5  ;;  %v154_v12 = vsel %vm150_vm1, %v146_v11, -inf  ;;  %v151_v23 = vsel %vm150_vm1, %v145_v10, -inf  ;;  %p405_p9 = pnand %p404_p8, %p398_p5 }
  0x41   :  { %178 = vmax.xlane.f32.xlu0 %v177_v6 }
  0x57   :  { %101 = vrot.lane.b32.xlu0 %v84_v8, %s478_s2 }
  0x76   :  { %155 = vmax.xlane.f32.xlu0 %v154_v12  ;;  %v234_v12 = vlaneseq }
  0xca   :  { %v176_v13 = vpop.xlane.xlu0 %175 }
  0xcb   :  { %v180_v14 = vsub.f32 %v148_v3, %v176_v13 }
  0xcd   :  { %v182_v15 = vmul.f32 1.442695, %v180_v14 }
  0xce   :  { %v179_v16 = vpop.xlane.xlu0 %178 }
  0xcf   :  { %319 = vpow2.f32 %v182_v15  ;;  %v181_v17 = vsub.f32 %v149_v4, %v179_v16  ;;  %v235_v16 = vshrl.u32 %v234_v12, 7 }
  0xd1   :  { %v184_v18 = vmul.f32 1.442695, %v181_v17 }
  0xd2   :  { %v102_v24 = vpop.permute.xlu0 %101 }
  0xd3   :  { %321 = vpow2.f32 %v184_v18  ;;  %v107_v25 = vsel %vm86_vm2, %v102_v24, 0.0 }
  0xd9   :  { %v559_v19 = vpop.eup %319 }
  0xda   :  { %188 = vrot.lane.b32.xlu1 %v559_v19, %s479_s29 }
  0xdd   :  { %v565_v21 = vpop.eup %321 }
  0xde   :  { %190 = vrot.lane.b32.xlu1 %v565_v21, %s479_s29 }
  0xe2   :  { %103 = vrot.lane.b32.xlu1 %v85_v22, %s478_s2 }
 0x103   :  { %v156_v32 = vpop.xlane.xlu0 %155 }
 0x104   :  { %v158_v33 = vsub.f32 %v146_v11, %v156_v32 }
 0x106   :  { %152 = vmax.xlane.f32.xlu1 %v151_v23  ;;  %v161_v34 = vmul.f32 1.442695, %v158_v33 }
 0x108   :  { %323 = vpow2.f32 %v161_v34 }
 0x10a   :  { %108 = vadd.xlane.f32.xlu1 %v107_v25 }
 0x112   :  { %v324_v36 = vpop.eup %323 }
 0x113   :  { %v166_v39 = vsel %vm150_vm1, %v324_v36, 0.0 }
 0x14c   :  { %v189_v26 = vpop.permute.xlu1 %188 }
 0x14d   :  { %v194_v30 = vsel %vm150_vm1, %v189_v26, 0.0 }
 0x150   :  { %v191_v27 = vpop.permute.xlu1 %190 }
 0x151   :  { %v197_v31 = vsel %vm150_vm1, %v191_v27, 0.0 }
 0x154   :  { %v104_v28 = vpop.permute.xlu1 %103 }
 0x155   :  { %v110_v29 = vsel %vm86_vm2, %v104_v28, 0.0 }
 0x156   :  { %111 = vadd.xlane.f32.xlu1 %v110_v29 }
 0x15a   :  { %195 = vadd.xlane.f32.xlu1 %v194_v30 }
 0x15e   :  { %198 = vadd.xlane.f32.xlu1 %v197_v31 }
 0x16f   :  { %215 = vrot.lane.b32.xlu1 %v158_v33, %s479_s29 }
 0x193   :  { %v153_v37 = vpop.xlane.xlu1 %152  ;;  %88 = vadd.xlane.f32.xlu1 %v87_v35 }
 0x194   :  { %v157_v38 = vsub.f32 %v145_v10, %v153_v37  ;;  %v481_v10 = vmov 1966171168  }
 0x195   :  { %v232_v11 = vunpack.c.l.s4 %v481_v10 }
 0x196   :  { %213 = vrot.lane.b32.xlu0 %v157_v38, %s479_s29  ;;  %v159_v40 = vmul.f32 1.442695, %v157_v38 }
 0x197   :  { %167 = vadd.xlane.f32.xlu1 %v166_v39  ;;  %v109_v44 = vpop.xlane.xlu1 %108  ;;  %v233_v15 = vunpack.c.0.s8 %v232_v11 }
 0x198   :  { %325 = vpow2.f32 %v159_v40  ;;  %v113_v45 = vmax.f32 %v109_v44, 1e-24  ;;  %v251_v44 = vld [vmem:[#allocation12] sm:$0x1] }
 0x19a   :  { %327 = vrsqrt.f32 %v113_v45 }
 0x1a2   :  { %v326_v42 = vpop.eup %325 }
 0x1a3   :  { %v163_v43 = vsel %vm150_vm1, %v326_v42, 0.0 }
 0x1a4   :  { %v328_v46 = vpop.eup %327 }
 0x1a5   :  { %v117_v47 = vmul.f32 %v328_v46, %v553_v7 }
 0x1b5   :  { %91 = vadd.xlane.f32.xlu0 %v90_v41 }
 0x1b9   :  { %164 = vadd.xlane.f32.xlu0 %v163_v43 }
 0x1cf   :  { %122 = vrot.lane.b32.xlu0 %v117_v47, %s478_s2 }
 0x1e3   :  { %v112_v49 = vpop.xlane.xlu1 %111 }
 0x1e4   :  { %v114_v50 = vmax.f32 %v112_v49, 1e-24 }
 0x1e6   :  { %329 = vrsqrt.f32 %v114_v50 }
 0x1e7   :  { %v196_v51 = vpop.xlane.xlu1 %195 }
 0x1eb   :  { %v199_v52 = vpop.xlane.xlu1 %198 }
 0x1ec   :  { %331 = vrcp.f32 %v199_v52 }
 0x1ed   :  { %333 = vrcp.f32 %v196_v51 }
 0x1ef   :  { %v216_v0 = vpop.permute.xlu1 %215 }
 0x1f0   :  { %v330_v53 = vpop.eup %329 }
 0x1f1   :  { %v118_v54 = vmul.f32 %v330_v53, %v563_v20 }
 0x1f3   :  { %124 = vrot.lane.b32.xlu1 %v118_v54, %s478_s2 }
 0x1f6   :  { %v332_v55 = vpop.eup %331 }
 0x1f7   :  { %v203_v56 = vmul.f32 %v332_v55, %v199_v52  ;;  %v334_v57 = vpop.eup %333 }
 0x1f8   :  { %v202_v58 = vmul.f32 %v334_v57, %v196_v51 }
 0x1f9   :  { %v205_v59 = vsub.f32 2.0, %v203_v56 }
 0x1fa   :  { %v204_v60 = vsub.f32 2.0, %v202_v58  ;;  %v119_v58 = vld [vmem:[#allocation9] sm:$0x1] }
 0x1fb   :  { %v207_v61 = vmul.f32 %v332_v55, %v205_v59 }
 0x1fc   :  { %v206_v62 = vmul.f32 %v334_v57, %v204_v60 }
 0x1fd   :  { %v209_v63 = vmul.f32 %v565_v21, %v207_v61 }
 0x1fe   :  { %v208_v2 = vmul.f32 %v559_v19, %v206_v62  ;;  %v236_v19 = vsub.s32 %v233_v15, %v235_v16 }
 0x1ff   :  { %v220_v1 = vmul.f32 %v216_v0, %v209_v63 }
 0x201   :  { %v222_v5 = vsel %vm173_vm0, %v220_v1, 0.0 }
 0x208   :  { %v214_v3 = vpop.permute.xlu0 %213 }
 0x209   :  { %v219_v4 = vmul.f32 %v214_v3, %v208_v2 }
 0x20b   :  { %v221_v6 = vsel %vm173_vm0, %v219_v4, 0.0 }
 0x20c   :  { %v223_v8 = vadd.f32 %v222_v5, %v221_v6 }
 0x20e   :  { %v224_v9 = vrot.slane %v223_v8, 4 }
 0x210   :  { %v225_v13 = vadd.f32 %v224_v9, %v223_v8 }
 0x212   :  { %v226_v14 = vrot.slane %v225_v13, 2 }
 0x214   :  { %v227_v17 = vadd.f32 %v226_v14, %v225_v13 }
 0x216   :  { %v228_v18 = vrot.slane %v227_v17, 1 }
 0x218   :  { %v229_v21 = vadd.f32 %v228_v18, %v227_v17 }
 0x21a   :  { %v237_v22 = vrot.slane %v229_v21, %v236_v19 }
 0x21c   :  { %v244_v23 = vrot.slane %v237_v22, %v236_v19 }
 0x21e   :  { %245 = vrot.lane.b32.xlu1 %v244_v23, %s479_s29 }
 0x220   :  { %v89_v24 = vpop.xlane.xlu1 %88 }
 0x221   :  { %v93_v28 = vmax.f32 %v89_v24, 1e-24 }
 0x224   :  { %v168_v25 = vpop.xlane.xlu1 %167 }
 0x225   :  { %335 = vlog2.f32 %v168_v25 }
 0x22f   :  { %v336_v29 = vpop.eup %335 }
 0x230   :  { %v172_v32 = vmul.f32 0.6931472, %v336_v29 }
 0x242   :  { %v92_v26 = vpop.xlane.xlu0 %91 }
 0x243   :  { %v94_v31 = vmax.f32 %v92_v26, 1e-24 }
 0x246   :  { %v165_v27 = vpop.xlane.xlu0 %164 }
 0x247   :  { %337 = vlog2.f32 %v165_v27 }
 0x248   :  { %339 = vrsqrt.f32 %v93_v28 }
 0x249   :  { %341 = vrsqrt.f32 %v94_v31 }
 0x24a   :  { %v123_v43 = vpop.permute.xlu0 %122 }
 0x251   :  { %v338_v30 = vpop.eup %337 }
 0x252   :  { %v170_v33 = vmul.f32 0.6931472, %v338_v30  ;;  %v340_v38 = vpop.eup %339 }
 0x253   :  { %v97_v40 = vmul.f32 %v340_v38, %v553_v7  ;;  %v342_v42 = vpop.eup %341 }
 0x254   :  { %v252_v34 = vadd.f32 %v172_v32, %v170_v33  ;;  %v98_v47 = vmul.f32 %v342_v42, %v563_v20 }
 0x255   :  { %v128_v46 = vmul.f32 %v123_v43, %v97_v40 }
 0x256   :  { %v253_v35 = vrot.slane %v252_v34, 4 }
 0x257   :  { %v130_v50 = vsel %vm86_vm2, %v128_v46, 0.0 }
 0x258   :  { %v254_v36 = vadd.f32 %v253_v35, %v252_v34 }
 0x25a   :  { %v255_v37 = vrot.slane %v254_v36, 2 }
 0x25c   :  { %v256_v39 = vadd.f32 %v255_v37, %v254_v36 }
 0x25e   :  { %v257_v41 = vrot.slane %v256_v39, 1 }
 0x260   :  { %v258_v45 = vadd.f32 %v257_v41, %v256_v39 }
 0x262   :  { %v259_v48 = vadd.f32 %v258_v45, %v251_v44 }
 0x264   :  { %261 = vst.msk [vmem:[#allocation12] sm:$0x1] %vm78_vm3, %v259_v48 }
 0x265   :  { %v125_v49 = vpop.permute.xlu1 %124 }
 0x266   :  { %v129_v51 = vmul.f32 %v125_v49, %v98_v47 }
 0x268   :  { %v131_v52 = vsel %vm86_vm2, %v129_v51, 0.0 }
 0x269   :  { %v132_v53 = vadd.f32 %v131_v52, %v130_v50 }
 0x26b   :  { %v133_v54 = vrot.slane %v132_v53, 4 }
 0x26d   :  { %v134_v7 = vadd.f32 %v133_v54, %v132_v53 }
 0x26f   :  { %v135_v55 = vrot.slane %v134_v7, 2 }
 0x271   :  { %v136_v56 = vadd.f32 %v135_v55, %v134_v7 }
 0x273   :  { %v137_v57 = vrot.slane %v136_v56, 1 }
 0x275   :  { %v138_v59 = vadd.f32 %v137_v57, %v136_v56 }
 0x277   :  { %v139_v20 = vadd.f32 %v138_v59, %v119_v58 }
 0x279   :  { %141 = vst.msk [vmem:[#allocation9] sm:$0x1] %vm74_vm4, %v139_v20 }
 0x27a   :  { %408 = shalt.err (!%p405_p9)
}
 0x27b   :  { %s409_s11 = scalar_lea.hbm %s649_s3, 16 }
 0x27c   :  { %p410_p10 = scmp.ne.s32.totalorder %s649_s3, %s409_s11  ;;  %p413_p11 = scmp.lt.u32.totalorder %s409_s11, %s649_s3 }
 0x27e   :  { %p415_p12 = pnand %p413_p11, %p410_p10 }
 0x280   :  { %418 = shalt.err (!%p415_p12)
}
 0x281   :  { %271 = dma.vmem_to_hbm [thread:$0]  %s269_s6, 16, %s649_s3, [#allocation4]   ;;  %v210_v60 = vld [vmem:[#allocation10] sm:$0x1] }
 0x282   :  { %s483_s17 = smov [#allocation10]   ;;  %s484_s19 = smov [#allocation12]  }
 0x283   :  { %s278_s18 = sshll.u32 %s483_s17, 4  ;;  %s288_s20 = sshll.u32 %s484_s19, 4  ;;  %s279_s18 = int_to_ptr.vmem [resolvable:$true] %s278_s18  ;;  %s613_s20 = int_to_ptr.vmem [resolvable:$true] %s288_s20 }
 0x284   :  { %s419_s21 = scalar_lea.vmem %s279_s18, 16  ;;  %s423_s22 = scalar_lea.vmem %s279_s18, 32 }
 0x285   :  { %p420_p13 = scmp.ne.s32.totalorder %s279_s18, %s419_s21  ;;  %p424_p0 = scmp.lt.s32.totalorder %s279_s18, %s279_s18 }
 0x286   :  { %p425_p1 = scmp.lt.s32.totalorder %s423_s22, %s419_s21 }
 0x288   :  { %p426_p2 = por %p425_p1, %p424_p0 }
 0x28a   :  { %p427_p3 = pnand %p426_p2, %p420_p13 }
 0x290   :  { %v246_v61 = vpop.permute.xlu1 %245 }
 0x291   :  { %v248_v62 = vadd.f32 %v246_v61, %v210_v60 }
 0x293   :  { %250 = vst.msk [vmem:[#allocation10] sm:$0x1] %vm76_vm5, %v248_v62 }
 0x294   :  { %430 = shalt.err (!%p427_p3)
}
 0x295   :  { %s431_s24 = scalar_lea.hbm %s650_s4, 16 }
 0x296   :  { %p432_p4 = scmp.ne.s32.totalorder %s650_s4, %s431_s24  ;;  %p435_p5 = scmp.lt.u32.totalorder %s431_s24, %s650_s4 }
 0x298   :  { %p437_p6 = pnand %p435_p5, %p432_p4 }
 0x29a   :  { %440 = shalt.err (!%p437_p6)
}
 0x29b   :  { %281 = dma.vmem_to_hbm [thread:$0]  %s279_s18, 16, %s650_s4, [#allocation11]  }
 0x29c   :  { %s441_s29 = scalar_lea.vmem %s613_s20, 16  ;;  %s445_s30 = scalar_lea.vmem %s613_s20, 32 }
 0x29d   :  { %p442_p7 = scmp.ne.s32.totalorder %s613_s20, %s441_s29  ;;  %p446_p8 = scmp.lt.s32.totalorder %s613_s20, %s613_s20 }
 0x29e   :  { %p447_p9 = scmp.lt.s32.totalorder %s445_s30, %s441_s29 }
 0x2a0   :  { %p448_p10 = por %p447_p9, %p446_p8 }
 0x2a2   :  { %p449_p11 = pnand %p448_p10, %p442_p7 }
 0x2a4   :  { %452 = shalt.err (!%p449_p11)
}
 0x2a5   :  { %s453_s8 = scalar_lea.hbm %s651_s5, 16 }
 0x2a6   :  { %p454_p12 = scmp.ne.s32.totalorder %s651_s5, %s453_s8  ;;  %p457_p13 = scmp.lt.u32.totalorder %s453_s8, %s651_s5 }
 0x2a8   :  { %p459_p0 = pnand %p457_p13, %p454_p12 }
 0x2aa   :  { %462 = shalt.err (!%p459_p0)
}
 0x2ab   :  { %291 = dma.vmem_to_hbm [thread:$0]  %s613_s20, 16, %s651_s5, [#allocation11]  }
 0x2ac   :  { %469 = dma.done.wait [#allocation4], 16  }
 0x2ad   :  { %470 = vsyncadd [#allocation4], 4294967280 }
 0x2ae   :  { %471 = dma.done.wait [#allocation11], 32  }
 0x2af   :  { %472 = vsyncadd [#allocation11], 4294967264 }
 0x2b0   :  { %301 = vsyncpa [#allocation3], 1 }
 0x2b1   :  { %302 = vsyncpa [#allocation8], 1 }
 0x2b2   :  { %303 = vsyncpa [#allocation4], 1 }
 0x2b3   :  { %304 = vsyncpa [#allocation11], 1 }
 0x2b4   :  { %305 = vsyncpa [#allocation5], 1 }

</bundles_post_ra>
